<compile_context>
chip_gen: v7x
topology: tpu7x:2x2x1
jax: 0.10.0
libtpu: 0.0.40
codegen_flags: <defaults>
</compile_context>

<pallas_src>
import jax
import jax.numpy as jnp
from jax.experimental import pallas as pl
from jax.experimental.pallas import tpu as pltpu


_VMEM_LIMIT_BYTES = 32 * 1024 * 1024  # covers 6 buffers x 4 MiB on v7x; well
                                      # inside physical VMEM on every generation.


def _block_bytes_target():
    """~4 MiB blocks on v7x (per-step overhead ~20% at 3.2 TB/s with 2 MiB),
    ~2 MiB elsewhere (overhead already <7%; v5e scoped VMEM is only 16 MiB)."""
    try:
        kind = jax.devices()[0].device_kind.lower()
    except Exception:
        kind = ""
    if "v7" in kind:
        return 4 * 1024 * 1024
    return 2 * 1024 * 1024


def _round_up(x, m):
    return ((x + m - 1) // m) * m


def _add_kernel(x_ref, pe_ref, o_ref):
    # Shapes either match exactly (3-D path) or broadcast along sublanes
    # ((TB, TN) + (1, TN) in the lane-dense path).  Add in f32 (matches PyTorch
    # type promotion when x is bf16 and the parameter is f32); the casts ride
    # the VPU, which is idle in this DMA-bound kernel.
    acc = x_ref[...].astype(jnp.float32) + pe_ref[...].astype(jnp.float32)
    o_ref[...] = acc.astype(o_ref.dtype)


def _pos_enc_3d(x, pe, block_bytes):
    """x: (B, S, E) with E a multiple of 128; pe: (S, E)."""
    B, S, E = x.shape
    itemsize = jnp.dtype(x.dtype).itemsize
    sublane = max(1, 32 // itemsize)  # 8 f32, 16 bf16, 32 int8

    # Sublane-aligned row tile near the byte target; cdiv grid masks the ragged
    # last block, so no full-dim fallback is ever needed.
    rows = max(sublane, (block_bytes // max(1, E * itemsize)) // sublane * sublane)
    TS = min(rows, _round_up(S, sublane))
    grid_s = pl.cdiv(S, TS)

    return pl.pallas_call(
        _add_kernel,
        out_shape=jax.ShapeDtypeStruct((B, S, E), x.dtype),
        grid_spec=pltpu.PrefetchScalarGridSpec(
            num_scalar_prefetch=0,
            # Batch innermost: the pe block index (s, 0) is constant while b
            # varies, so the parameter tile is fetched once per s-tile, not
            # once per (s, b) step.
            grid=(grid_s, B),
            in_specs=[
                pl.BlockSpec((pl.Squeezed(), TS, E), lambda s, b: (b, s, 0)),
                # pe only changes once per B inner steps -> single-buffer it and
                # let the saved VMEM go to the x/out double buffers.
                pl.BlockSpec((TS, E), lambda s, b: (s, 0),
                             pipeline_mode=pl.Buffered(1)),
            ],
            out_specs=pl.BlockSpec((pl.Squeezed(), TS, E),
                                   lambda s, b: (b, s, 0)),
        ),
        compiler_params=pltpu.CompilerParams(
            dimension_semantics=("parallel", "parallel"),
            vmem_limit_bytes=_VMEM_LIMIT_BYTES,
        ),
    )(x, pe)


def _pos_enc_2d(x2, pe2, block_bytes):
    """Lane-dense path. x2: (B, N), pe2: (1, N) with N = S*E."""
    B, N = x2.shape
    itemsize = jnp.dtype(x2.dtype).itemsize

    # Tile the batch too: bounds block bytes for large B and adds a second
    # "parallel" grid axis (v7x megacore).  Small B uses the exact full dim.
    TB = B if B <= 256 else 256  # 256 is a multiple of every sublane count
    grid_b = pl.cdiv(B, TB)

    # Lane tile (multiple of 128) near the byte target; cdiv grid masks ragged.
    cols = max(128, (block_bytes // max(1, TB * itemsize)) // 128 * 128)
    TN = min(cols, _round_up(N, 128))
    grid_n = pl.cdiv(N, TN)

    return pl.pallas_call(
        _add_kernel,
        out_shape=jax.ShapeDtypeStruct((B, N), x2.dtype),
        grid_spec=pltpu.PrefetchScalarGridSpec(
            num_scalar_prefetch=0,
            # Batch innermost: pe block index (0, n) constant across b-tiles.
            grid=(grid_n, grid_b),
            in_specs=[
                pl.BlockSpec((TB, TN), lambda n, b: (b, n)),
                pl.BlockSpec((1, TN), lambda n, b: (0, n)),
            ],
            out_specs=pl.BlockSpec((TB, TN), lambda n, b: (b, n)),
        ),
        compiler_params=pltpu.CompilerParams(
            dimension_semantics=("parallel", "parallel"),
            vmem_limit_bytes=_VMEM_LIMIT_BYTES,
        ),
    )(x2, pe2)


def positional_encoding(x, embedding_params):
    """x: (B, S, E), embedding_params: (S, E) -> (B, S, E) = x + pe."""
    B, S, E = x.shape
    assert embedding_params.shape == (S, E)
    block_bytes = _block_bytes_target()

    if E % 128 == 0:
        return _pos_enc_3d(x, embedding_params, block_bytes)

    # E too narrow / not lane-aligned: flatten (S, E) -> (S*E,) so the output
    # last dim is lane-dense (unmasked vector stores); reshapes are layout-free.
    x2 = x.reshape(B, S * E)
    pe2 = embedding_params.reshape(1, S * E)
    out2 = _pos_enc_2d(x2, pe2, block_bytes)
    return out2.reshape(B, S, E)


if __name__ == "__main__":
    # Small shapes consistent with the module: batch=2, sequence=8, embedding=32.
    B, S, E = 2, 8, 32

    key = jax.random.PRNGKey(0)
    kx, kp = jax.random.split(key)

    x = jax.random.normal(kx, (B, S, E), dtype=jnp.float32)
    # Deterministic stand-in for torch.randn(sequence_size, embedding_size).
    embedding_params = jax.random.normal(kp, (S, E), dtype=jnp.float32)

    out = jax.block_until_ready(positional_encoding(x, embedding_params))

    ref = x + embedding_params[None, :, :]
    assert out.shape == (B, S, E)
    assert jnp.allclose(out, ref, atol=1e-6, rtol=1e-6)

    print("KERNEL_OK")
</pallas_src>

<mosaic_0001>
module attributes {stable_mosaic.version = 11 : i64} {
  func.func @_add_kernel(%arg0: i32, %arg1: i32, %arg2: memref<2x256xf32, #tpu.memory_space<vmem>>, %arg3: memref<1x256xf32, #tpu.memory_space<vmem>>, %arg4: memref<2x256xf32, #tpu.memory_space<vmem>>) attributes {dimension_semantics = [#tpu.dimension_semantics<parallel>, #tpu.dimension_semantics<parallel>], iteration_bounds = array<i64: 1, 1>, scalar_prefetch = 0 : i64, scratch_operands = 0 : i64, tpu.core_type = #tpu.core_type<tc>, window_params = [{transform_indices = @transform_0, window_bounds = array<i64: 2, 256>}, {transform_indices = @transform_1, window_bounds = array<i64: 1, 256>}, {transform_indices = @transform_2, window_bounds = array<i64: 2, 256>}]} {
    %c0 = arith.constant 0 : index
    %c0_0 = arith.constant 0 : index
    %0 = vector.load %arg2[%c0, %c0_0] : memref<2x256xf32, #tpu.memory_space<vmem>>, vector<2x256xf32>
    %c0_1 = arith.constant 0 : index
    %c0_2 = arith.constant 0 : index
    %1 = vector.load %arg3[%c0_1, %c0_2] : memref<1x256xf32, #tpu.memory_space<vmem>>, vector<1x256xf32>
    %2 = vector.broadcast %1 : vector<1x256xf32> to vector<2x256xf32>
    %3 = arith.addf %0, %2 : vector<2x256xf32>
    %c0_3 = arith.constant 0 : index
    %c0_4 = arith.constant 0 : index
    %4 = vector.load %arg4[%c0_3, %c0_4] : memref<2x256xf32, #tpu.memory_space<vmem>>, vector<2x256xf32>
    tpu.vector_store %arg4[%c0_3, %c0_4], %3 {strides = array<i32>} : memref<2x256xf32, #tpu.memory_space<vmem>>, vector<2x256xf32>,
    return
  }
  func.func @transform_0(%arg0: i32, %arg1: i32) -> (i32, i32) {
    %c0_i32 = arith.constant 0 : i32
    return %arg1, %arg0 : i32, i32
  }
  func.func @transform_1(%arg0: i32, %arg1: i32) -> (i32, i32) {
    %c0_i32 = arith.constant 0 : i32
    %c0_i32_0 = arith.constant 0 : i32
    return %c0_i32, %arg0 : i32, i32
  }
  func.func @transform_2(%arg0: i32, %arg1: i32) -> (i32, i32) {
    %c0_i32 = arith.constant 0 : i32
    return %arg1, %arg0 : i32, i32
  }
}

</mosaic_0001>

<bundles_post_ra>
// kernel: tpu_custom_call.1
= control target key start
LH: loop header
LB: loop body
LE: loop exit
PB: predicated region body
PF: predicated region fallthrough
CT: control target
= control target key end

     0   :  { %7 = vsyncpa [#allocation3], 0  ;;  %s157_s0 = inlined_call_operand.hbm [shape: f32[2,256], index: 0, kind: input, shape index: {}]   ;;  %s158_s1 = inlined_call_operand.vmem [shape: f32[1,256], index: 1, kind: input, shape index: {}]   ;;  %s159_s2 = inlined_call_operand.hbm [shape: f32[2,256], index: 2, kind: output, shape index: {}]  }
   0x1   :  { %8 = vsyncpa [#allocation4], 0  ;;  %s112_s9 = smov [#allocation2]   ;;  %s64_s13 = scalar_lea.hbm %s157_s0, 64 }
   0x2   :  { %s15_s10 = sshll.u32 %s112_s9, 4  ;;  %p65_p0 = scmp.ne.s32.totalorder %s157_s0, %s64_s13  ;;  %s16_s10 = int_to_ptr.vmem [resolvable:$true] %s15_s10 }
   0x3   :  { %p68_p1 = scmp.lt.u32.totalorder %s64_s13, %s157_s0 }
   0x5   :  { %p70_p2 = pnand %p68_p1, %p65_p0 }
   0x7   :  { %73 = shalt.err (!%p70_p2)
}
   0x8   :  { %s74_s18 = scalar_lea.vmem %s16_s10, 64  ;;  %p79_p4 = scmp.lt.s32.totalorder %s16_s10, %s16_s10 }
   0x9   :  { %p75_p3 = scmp.ne.s32.totalorder %s16_s10, %s74_s18  ;;  %p80_p5 = scmp.lt.s32.totalorder %s74_s18, %s74_s18 }
   0xb   :  { %p81_p6 = por %p80_p5, %p79_p4 }
   0xd   :  { %p82_p7 = pnand %p81_p6, %p75_p3 }
   0xf   :  { %85 = shalt.err (!%p82_p7)
}
  0x10   :  { %18 = dma.hbm_to_vmem [thread:$0]  %s157_s0, 64, %s16_s10, [#allocation3]  }
  0x11   :  { %108 = dma.done.wait [#allocation3], 64  }
  0x12   :  { %109 = vsyncadd [#allocation3], 4294967232  ;;  %v27_v0 = vlaneseq  ;;  %v113_v1 = vmov 1983009808   ;;  %v25_v7 = vld [vmem:[%s158_s1] sm:$0x3] }
  0x13   :  { %v37_v2 = vunpack.c.l.s4 %v113_v1  ;;  %v24_v12 = vld [vmem:[#allocation2] sm:$0xf]  ;;  %s114_s23 = smov [#allocation5]  }
  0x14   :  { %v28_v3 = vshrl.u32 %v27_v0, 7  ;;  %s52_s0 = sshll.u32 %s114_s23, 4  ;;  %s53_s0 = int_to_ptr.vmem [resolvable:$true] %s52_s0 }
  0x15   :  { %v38_v6 = vunpack.c.0.s8 %v37_v2  ;;  %s86_s24 = scalar_lea.vmem %s53_s0, 64  ;;  %p91_p9 = scmp.lt.s32.totalorder %s53_s0, %s53_s0 }
  0x16   :  { %v29_v4 = vsub.s32 0, %v28_v3  ;;  %v33_v5 = vsub.s32 1, %v28_v3  ;;  %p87_p8 = scmp.ne.s32.totalorder %s53_s0, %s86_s24  ;;  %p92_p10 = scmp.lt.s32.totalorder %s86_s24, %s86_s24 }
  0x17   :  { %v41_v10 = vsub.s32 %v38_v6, %v28_v3 }
  0x18   :  { %v30_v8 = vrot.slane %v25_v7, %v29_v4  ;;  %v34_v9 = vrot.slane %v25_v7, %v33_v5  ;;  %p93_p11 = por %p92_p10, %p91_p9 }
  0x1a   :  { %v35_v11 = vcombine.low %v30_v8, %v34_v9  ;;  %p94_p12 = pnand %p93_p11, %p87_p8 }
  0x1c   :  { %v42_v13 = vrot.slane %v35_v11, %v41_v10 }
  0x1e   :  { %v44_v14 = vadd.f32 %v42_v13, %v24_v12 }
  0x20   :  { %45 = vst [vmem:[#allocation5] sm:$0xf] %v44_v14 }
  0x21   :  { %97 = shalt.err (!%p94_p12)
}
  0x22   :  { %s98_s26 = scalar_lea.hbm %s159_s2, 64 }
  0x23   :  { %p99_p13 = scmp.ne.s32.totalorder %s159_s2, %s98_s26  ;;  %p102_p0 = scmp.lt.u32.totalorder %s98_s26, %s159_s2 }
  0x25   :  { %p104_p1 = pnand %p102_p0, %p99_p13 }
  0x27   :  { %107 = shalt.err (!%p104_p1)
}
  0x28   :  { %55 = dma.vmem_to_hbm [thread:$0]  %s53_s0, 64, %s159_s2, [#allocation4]  }
  0x29   :  { %110 = dma.done.wait [#allocation4], 64  }
  0x2a   :  { %111 = vsyncadd [#allocation4], 4294967232 }
  0x2b   :  { %59 = vsyncpa [#allocation3], 1 }
  0x2c   :  { %60 = vsyncpa [#allocation4], 1 }

</bundles_post_ra>
